<compile_context>
chip_gen: v7x
topology: tpu7x:2x2x1
jax: 0.10.0
libtpu: 0.0.40
codegen_flags: <defaults>
</compile_context>

<pallas_src>
import functools

import jax
import jax.numpy as jnp
from jax import lax
from jax.experimental import pallas as pl
from jax.experimental.pallas import tpu as pltpu


def _tpu_vmem_bytes() -> int:
    """Physical VMEM per TensorCore; conservative fallback if the query fails."""
    try:
        info = pltpu.get_tpu_info()
        vmem = getattr(info, "vmem_capacity_bytes", None)
        if vmem:
            return int(vmem)
    except Exception:
        pass
    return 64 * 1024 * 1024  # v7x per-TC size = smallest / safest assumption


def _plan_spectral_tiling(batch: int, c_in: int, c_out: int, n_modes: int):
    """Pick the mode-tile size and scoped-VMEM limit from the chip's VMEM."""
    vmem = _tpu_vmem_bytes()
    # Per-grid-step block budget (lhs + weight + out, re+im planes, f32):
    # ~15% of physical VMEM per step -> ~30% live with double-buffering, well
    # under the explicit 75%-of-physical scoped limit on every generation
    # (v5e/v6e: 128 MiB physical, v7x: 64 MiB per TensorCore).
    budget = min(20 * 1024 * 1024, max(2 * 1024 * 1024, int(vmem * 0.15)))
    per_mode_bytes = 4 * 2 * (batch * c_in + c_in * c_out + batch * c_out)
    mode_tile = int(max(1, min(n_modes, budget // per_mode_bytes)))
    n_tiles = -(-n_modes // mode_tile)
    padded_modes = n_tiles * mode_tile
    vmem_limit = int(vmem * 3 // 4)
    return mode_tile, padded_modes, vmem_limit


def pack_spectral_weights(w1_re, w1_im, w2_re, w2_im, padded_modes: int):
    """One-time parameter relayout (hoisted out of the jitted forward).

    (Ci, Co, m1, m2) re/im pairs for both mode blocks -> (2, 2, Mp, Ci, Co) f32
    with layout [mode-block, re/im, flattened-mode (padded), c_in, c_out].
    """
    c_in, c_out, m1, m2 = w1_re.shape
    n_modes = m1 * m2
    w = jnp.stack([jnp.stack([w1_re, w1_im], axis=0),
                   jnp.stack([w2_re, w2_im], axis=0)], axis=0)       # (2,2,Ci,Co,m1,m2)
    w = w.astype(jnp.float32).reshape(2, 2, c_in, c_out, n_modes)
    w = jnp.transpose(w, (0, 1, 4, 2, 3))                            # (2,2,M,Ci,Co)
    if padded_modes > n_modes:
        w = jnp.pad(w, ((0, 0), (0, 0), (0, padded_modes - n_modes), (0, 0), (0, 0)))
    return w


def _spectral_modes_kernel(l_ref, w_ref, o_ref):
    """Mode-batched complex contraction on the MXU (Gauss/Karatsuba, 3 matmuls).

    l_ref: (2, Mt, B,  Ci)  [re/im, mode, batch, c_in]
    w_ref: (2, Mt, Ci, Co)  [re/im, mode, c_in,  c_out]
    o_ref: (2, Mt, B,  Co)  [re/im, mode, batch, c_out]
    """
    lr, li = l_ref[0], l_ref[1]
    wr, wi = w_ref[0], w_ref[1]

    def bmm(a, b):
        # Batched over the mode axis (dim 0), contracting c_in -> MXU matmuls,
        # f32 accumulation.
        return lax.dot_general(
            a, b,
            dimension_numbers=(((2,), (1,)), ((0,), (0,))),
            preferred_element_type=jnp.float32)

    t1 = bmm(lr, wr)
    t2 = bmm(li, wi)
    t3 = bmm(lr + li, wr + wi)
    o_ref[0] = t1 - t2          # real part:  lr@wr - li@wi
    o_ref[1] = t3 - t1 - t2     # imag part:  lr@wi + li@wr


def spectral_conv2d(x, w_packed, *, n_modes_1, n_modes_2, mode_tile, vmem_limit_bytes):
    """Forward pass of SpectralConv2d. x: (B, C_in, H, W) f32 -> (B, C_out, H, W) f32."""
    batch, c_in, h, w_sp = x.shape
    n_blocks, _, padded_modes, c_in_w, c_out = w_packed.shape
    m1, m2 = n_modes_1, n_modes_2
    n_modes = m1 * m2
    w_half = w_sp // 2 + 1
    assert n_blocks == 2 and c_in_w == c_in
    assert m1 <= h and m2 <= w_half, "retained modes exceed available rfft2 modes"
    assert padded_modes % mode_tile == 0 and padded_modes >= n_modes
    # NOTE: if 2*m1 > h the two retained row blocks overlap; the second scatter
    # below intentionally overwrites the first, matching the PyTorch module.

    # TODO(synk): rfft2 / irfft2 have no Pallas TPU equivalent; kept in XLA.
    xf = jnp.fft.rfft2(x)                                     # (B, Ci, H, Wh) c64

    # Mode-block extraction + complex->planar split + mode-major relayout.
    # The slice / real / imag / stack / transpose fuse into one XLA copy of the
    # small retained-mode slab (no separate full HBM round trip).
    blk = jnp.stack([xf[:, :, :m1, :m2], xf[:, :, h - m1:, :m2]], axis=0)
    blk = blk.reshape(2, batch, c_in, n_modes)
    lhs = jnp.stack([jnp.real(blk), jnp.imag(blk)], axis=1)   # (2, 2, B, Ci, M) f32
    lhs = jnp.transpose(lhs, (0, 1, 4, 2, 3))                 # (2, 2, M, B, Ci)
    if padded_modes > n_modes:
        lhs = jnp.pad(lhs, ((0, 0), (0, 0), (0, padded_modes - n_modes), (0, 0), (0, 0)))

    grid = (2, padded_modes // mode_tile)                     # (mode-block, mode tile)
    out = pl.pallas_call(
        _spectral_modes_kernel,
        out_shape=jax.ShapeDtypeStruct((2, 2, padded_modes, batch, c_out), jnp.float32),
        grid=grid,
        in_specs=[
            pl.BlockSpec((None, 2, mode_tile, batch, c_in), lambda g, t: (g, 0, t, 0, 0)),
            pl.BlockSpec((None, 2, mode_tile, c_in, c_out), lambda g, t: (g, 0, t, 0, 0)),
        ],
        out_specs=pl.BlockSpec((None, 2, mode_tile, batch, c_out),
                               lambda g, t: (g, 0, t, 0, 0)),
        compiler_params=pltpu.CompilerParams(
            dimension_semantics=("parallel", "parallel"),
            vmem_limit_bytes=vmem_limit_bytes),
    )(lhs, w_packed)

    out = out[:, :, :n_modes]                                     # strip mode padding
    out_c = (out[:, 0] + 1j * out[:, 1]).astype(jnp.complex64)    # (2, M, B, Co)
    out_c = jnp.transpose(out_c, (0, 2, 3, 1)).reshape(2, batch, c_out, m1, m2)

    # TODO(synk): scatter into the zero-padded spectrum stays in JAX glue
    # (irfft2 needs the full complex spectrum anyway).
    res = jnp.zeros((batch, c_out, h, w_half), dtype=jnp.complex64)
    res = res.at[:, :, :m1, :m2].set(out_c[0])
    res = res.at[:, :, h - m1:, :m2].set(out_c[1])      # same write order as PyTorch
    return jnp.fft.irfft2(res, s=(h, w_sp))             # (B, Co, H, W) float32


if __name__ == "__main__":
    # Small shapes consistent with the module's forward.
    batch, c_in, c_out, h, w_sp = 2, 4, 4, 16, 16
    m1, m2 = 4, 4

    key = jax.random.PRNGKey(0)
    k1, k2, k3, k4, kx = jax.random.split(key, 5)

    # Deterministic init mirroring: scale * torch.rand(..., dtype=cfloat)
    scale = 1.0 / (c_in * c_out)
    w1_re = scale * jax.random.uniform(k1, (c_in, c_out, m1, m2), dtype=jnp.float32)
    w1_im = scale * jax.random.uniform(k2, (c_in, c_out, m1, m2), dtype=jnp.float32)
    w2_re = scale * jax.random.uniform(k3, (c_in, c_out, m1, m2), dtype=jnp.float32)
    w2_im = scale * jax.random.uniform(k4, (c_in, c_out, m1, m2), dtype=jnp.float32)
    x = jax.random.normal(kx, (batch, c_in, h, w_sp), dtype=jnp.float32)

    # Tiling planned and weights packed ONCE (hoisted out of the jitted forward).
    mode_tile, padded_modes, vmem_limit = _plan_spectral_tiling(
        batch, c_in, c_out, m1 * m2)
    w_packed = jax.block_until_ready(
        pack_spectral_weights(w1_re, w1_im, w2_re, w2_im, padded_modes))

    fwd = jax.jit(functools.partial(
        spectral_conv2d, n_modes_1=m1, n_modes_2=m2,
        mode_tile=mode_tile, vmem_limit_bytes=vmem_limit))
    out = jax.block_until_ready(fwd(x, w_packed))

    # Pure-JAX reference for the full forward (correctness self-check).
    w1 = w1_re + 1j * w1_im
    w2 = w2_re + 1j * w2_im
    xf = jnp.fft.rfft2(x)
    ref = jnp.zeros((batch, c_out, h, w_sp // 2 + 1), dtype=jnp.complex64)
    ref = ref.at[:, :, :m1, :m2].set(
        jnp.einsum('bixy,ioxy->boxy', xf[:, :, :m1, :m2], w1))
    ref = ref.at[:, :, -m1:, :m2].set(
        jnp.einsum('bixy,ioxy->boxy', xf[:, :, -m1:, :m2], w2))
    ref = jnp.fft.irfft2(ref, s=(h, w_sp))

    assert out.shape == (batch, c_out, h, w_sp) and out.dtype == jnp.float32
    err = float(jnp.max(jnp.abs(out - ref)))
    assert jnp.allclose(out, ref, atol=1e-4, rtol=1e-4), f"max abs err {err}"
    print("KERNEL_OK")
</pallas_src>

<mosaic_0001>
module attributes {stable_mosaic.version = 11 : i64} {
  func.func @_spectral_modes_kernel(%arg0: i32, %arg1: i32, %arg2: memref<1x2x16x2x4xf32, #tpu.memory_space<vmem>>, %arg3: memref<1x2x16x4x4xf32, #tpu.memory_space<vmem>>, %arg4: memref<1x2x16x2x4xf32, #tpu.memory_space<vmem>>) attributes {dimension_semantics = [#tpu.dimension_semantics<parallel>, #tpu.dimension_semantics<parallel>], iteration_bounds = array<i64: 2, 1>, scalar_prefetch = 0 : i64, scratch_operands = 0 : i64, tpu.core_type = #tpu.core_type<tc>, window_params = [{transform_indices = @transform_0, window_bounds = array<i64: 1, 2, 16, 2, 4>}, {transform_indices = @transform_1, window_bounds = array<i64: 1, 2, 16, 4, 4>}, {transform_indices = @transform_2, window_bounds = array<i64: 1, 2, 16, 2, 4>}]} {
    %c0 = arith.constant 0 : index
    %c0_0 = arith.constant 0 : index
    %c0_1 = arith.constant 0 : index
    %c0_2 = arith.constant 0 : index
    %c0_3 = arith.constant 0 : index
    %0 = vector.load %arg2[%c0, %c0_0, %c0_1, %c0_2, %c0_3] : memref<1x2x16x2x4xf32, #tpu.memory_space<vmem>>, vector<1x1x16x2x4xf32>
    %1 = vector.shape_cast %0 : vector<1x1x16x2x4xf32> to vector<16x2x4xf32>
    %c0_4 = arith.constant 0 : index
    %c1 = arith.constant 1 : index
    %c0_5 = arith.constant 0 : index
    %c0_6 = arith.constant 0 : index
    %c0_7 = arith.constant 0 : index
    %2 = vector.load %arg2[%c0_4, %c1, %c0_5, %c0_6, %c0_7] : memref<1x2x16x2x4xf32, #tpu.memory_space<vmem>>, vector<1x1x16x2x4xf32>
    %3 = vector.shape_cast %2 : vector<1x1x16x2x4xf32> to vector<16x2x4xf32>
    %c0_8 = arith.constant 0 : index
    %c0_9 = arith.constant 0 : index
    %c0_10 = arith.constant 0 : index
    %c0_11 = arith.constant 0 : index
    %c0_12 = arith.constant 0 : index
    %4 = vector.load %arg3[%c0_8, %c0_9, %c0_10, %c0_11, %c0_12] : memref<1x2x16x4x4xf32, #tpu.memory_space<vmem>>, vector<1x1x16x4x4xf32>
    %5 = vector.shape_cast %4 : vector<1x1x16x4x4xf32> to vector<16x4x4xf32>
    %c0_13 = arith.constant 0 : index
    %c1_14 = arith.constant 1 : index
    %c0_15 = arith.constant 0 : index
    %c0_16 = arith.constant 0 : index
    %c0_17 = arith.constant 0 : index
    %6 = vector.load %arg3[%c0_13, %c1_14, %c0_15, %c0_16, %c0_17] : memref<1x2x16x4x4xf32, #tpu.memory_space<vmem>>, vector<1x1x16x4x4xf32>
    %7 = vector.shape_cast %6 : vector<1x1x16x4x4xf32> to vector<16x4x4xf32>
    %cst = arith.constant dense<0.000000e+00> : vector<16x2x4xf32>
    %8 = tpu.matmul %1, %5, %cst {dimension_numbers = #tpu.dot_dimension_numbers<[2], [1], [1], [2], [0, 0, 0, 1, 1, 2], [0], [0]>} : vector<16x2x4xf32>, vector<16x4x4xf32>, vector<16x2x4xf32> -> vector<16x2x4xf32>
    %cst_18 = arith.constant dense<0.000000e+00> : vector<16x2x4xf32>
    %9 = tpu.matmul %3, %7, %cst_18 {dimension_numbers = #tpu.dot_dimension_numbers<[2], [1], [1], [2], [0, 0, 0, 1, 1, 2], [0], [0]>} : vector<16x2x4xf32>, vector<16x4x4xf32>, vector<16x2x4xf32> -> vector<16x2x4xf32>
    %10 = arith.addf %1, %3 : vector<16x2x4xf32>
    %11 = arith.addf %5, %7 : vector<16x4x4xf32>
    %cst_19 = arith.constant dense<0.000000e+00> : vector<16x2x4xf32>
    %12 = tpu.matmul %10, %11, %cst_19 {dimension_numbers = #tpu.dot_dimension_numbers<[2], [1], [1], [2], [0, 0, 0, 1, 1, 2], [0], [0]>} : vector<16x2x4xf32>, vector<16x4x4xf32>, vector<16x2x4xf32> -> vector<16x2x4xf32>
    %13 = arith.subf %8, %9 : vector<16x2x4xf32>
    %c0_20 = arith.constant 0 : index
    %c0_21 = arith.constant 0 : index
    %c0_22 = arith.constant 0 : index
    %c0_23 = arith.constant 0 : index
    %c0_24 = arith.constant 0 : index
    %14 = vector.load %arg4[%c0_20, %c0_21, %c0_22, %c0_23, %c0_24] : memref<1x2x16x2x4xf32, #tpu.memory_space<vmem>>, vector<1x1x16x2x4xf32>
    %15 = vector.shape_cast %14 : vector<1x1x16x2x4xf32> to vector<16x2x4xf32>
    %16 = vector.shape_cast %13 : vector<16x2x4xf32> to vector<1x1x16x2x4xf32>
    tpu.vector_store %arg4[%c0_20, %c0_21, %c0_22, %c0_23, %c0_24], %16 {strides = array<i32>} : memref<1x2x16x2x4xf32, #tpu.memory_space<vmem>>, vector<1x1x16x2x4xf32>,
    %17 = arith.subf %12, %8 : vector<16x2x4xf32>
    %18 = arith.subf %17, %9 : vector<16x2x4xf32>
    %c0_25 = arith.constant 0 : index
    %c1_26 = arith.constant 1 : index
    %c0_27 = arith.constant 0 : index
    %c0_28 = arith.constant 0 : index
    %c0_29 = arith.constant 0 : index
    %19 = vector.load %arg4[%c0_25, %c1_26, %c0_27, %c0_28, %c0_29] : memref<1x2x16x2x4xf32, #tpu.memory_space<vmem>>, vector<1x1x16x2x4xf32>
    %20 = vector.shape_cast %19 : vector<1x1x16x2x4xf32> to vector<16x2x4xf32>
    %21 = vector.shape_cast %18 : vector<16x2x4xf32> to vector<1x1x16x2x4xf32>
    tpu.vector_store %arg4[%c0_25, %c1_26, %c0_27, %c0_28, %c0_29], %21 {strides = array<i32>} : memref<1x2x16x2x4xf32, #tpu.memory_space<vmem>>, vector<1x1x16x2x4xf32>,
    return
  }
  func.func @transform_0(%arg0: i32, %arg1: i32) -> (i32, i32, i32, i32, i32) {
    %c0_i32 = arith.constant 0 : i32
    %c0_i32_0 = arith.constant 0 : i32
    %c0_i32_1 = arith.constant 0 : i32
    %c0_i32_2 = arith.constant 0 : i32
    return %arg0, %c0_i32, %arg1, %c0_i32_0, %c0_i32_1 : i32, i32, i32, i32, i32
  }
  func.func @transform_1(%arg0: i32, %arg1: i32) -> (i32, i32, i32, i32, i32) {
    %c0_i32 = arith.constant 0 : i32
    %c0_i32_0 = arith.constant 0 : i32
    %c0_i32_1 = arith.constant 0 : i32
    %c0_i32_2 = arith.constant 0 : i32
    return %arg0, %c0_i32, %arg1, %c0_i32_0, %c0_i32_1 : i32, i32, i32, i32, i32
  }
  func.func @transform_2(%arg0: i32, %arg1: i32) -> (i32, i32, i32, i32, i32) {
    %c0_i32 = arith.constant 0 : i32
    %c0_i32_0 = arith.constant 0 : i32
    %c0_i32_1 = arith.constant 0 : i32
    %c0_i32_2 = arith.constant 0 : i32
    return %arg0, %c0_i32, %arg1, %c0_i32_0, %c0_i32_1 : i32, i32, i32, i32, i32
  }
}

</mosaic_0001>

<bundles_post_ra>
// kernel: reverse.1
= control target key start
LH: loop header
LB: loop body
LE: loop exit
PB: predicated region body
PF: predicated region fallthrough
CT: control target
= control target key end

     0   :  { %v71_v3 = vlaneseq  ;;  %v64_v9 = vld [vmem:[#allocation0 + $0x7] ss:$-1 sm:$0xff]  ;;  %v78_v12 = vld [vmem:[#allocation0 + $0x17] ss:$-1 sm:$0xff]  ;;  %s329_s0 = inlined_call_operand.vmem [shape: f32[2,4,16,7], index: 0, kind: input, shape index: {}]   ;;  %s330_s1 = inlined_call_operand.vmem [shape: f32[2,4,16,7], index: 1, kind: output, shape index: {}]  }
   0x1   :  { %v44_v0 = vld [vmem:[%s329_s0] sm:$0xff]  ;;  %v46_v1 = vld [vmem:[%s329_s0 + $0x8] sm:$0xff]  ;;  %v48_v2 = vld [vmem:[%s329_s0 + $0x10] sm:$0xff]  ;;  %v65_v10 = vrot.slane %v64_v9, 1  ;;  %v79_v14 = vrot.slane %v78_v12, 1 }
   0x2   :  { %45 = vst [vmem:[#allocation0 + $0x8] sm:$0xff] %v44_v0  ;;  %47 = vst [vmem:[#allocation0 + $0x18] sm:$0xff] %v46_v1  ;;  %v50_v4 = vld [vmem:[%s329_s0 + $0x18] sm:$0xff]  ;;  %v52_v5 = vld [vmem:[%s329_s0 + $0x20] sm:$0xff]  ;;  %v72_v11 = vshrl.u32 %v71_v3, 7 }
   0x3   :  { %49 = vst [vmem:[#allocation0 + $0x28] sm:$0xff] %v48_v2  ;;  %v54_v6 = vld [vmem:[%s329_s0 + $0x28] sm:$0xff]  ;;  %51 = vst [vmem:[#allocation0 + $0x38] sm:$0xff] %v50_v4  ;;  %v56_v7 = vld [vmem:[%s329_s0 + $0x30] sm:$0xff] }
   0x4   :  { %53 = vst [vmem:[#allocation0 + $0x48] sm:$0xff] %v52_v5  ;;  %55 = vst [vmem:[#allocation0 + $0x58] sm:$0xff] %v54_v6  ;;  %v58_v8 = vld [vmem:[%s329_s0 + $0x38] sm:$0xff]  ;;  %v92_v13 = vld [vmem:[#allocation0 + $0x27] ss:$-1 sm:$0xff]  ;;  %vm73_vm0 = vcmp.lt.s32.totalorder %v72_v11, 7 }
   0x5   :  { %57 = vst [vmem:[#allocation0 + $0x68] sm:$0xff] %v56_v7  ;;  %59 = vst [vmem:[#allocation0 + $0x78] sm:$0xff] %v58_v8  ;;  %v93_v15 = vrot.slane %v92_v13, 1  ;;  %v106_v16 = vld [vmem:[#allocation0 + $0x37] ss:$-1 sm:$0xff] }
   0x6   :  { %66 = vst [vmem:[#allocation1] sm:$0xff] %v65_v10  ;;  %v107_v17 = vrot.slane %v106_v16, 1  ;;  %v120_v18 = vld [vmem:[#allocation0 + $0x47] ss:$-1 sm:$0xff]  ;;  %v134_v19 = vld [vmem:[#allocation0 + $0x57] ss:$-1 sm:$0xff] }
   0x7   :  { %80 = vst [vmem:[#allocation1 + $0x8] sm:$0xff] %v79_v14  ;;  %94 = vst [vmem:[#allocation1 + $0x10] sm:$0xff] %v93_v15  ;;  %v121_v20 = vrot.slane %v120_v18, 1  ;;  %v135_v21 = vrot.slane %v134_v19, 1  ;;  %v148_v22 = vld [vmem:[#allocation0 + $0x67] ss:$-1 sm:$0xff] }
   0x8   :  { %v162_v23 = vld [vmem:[#allocation0 + $0x77] ss:$-1 sm:$0xff]  ;;  %108 = vst [vmem:[#allocation1 + $0x18] sm:$0xff] %v107_v17  ;;  %v149_v24 = vrot.slane %v148_v22, 1 }
   0x9   :  { %v163_v25 = vrot.slane %v162_v23, 1  ;;  %v69_v26 = vld [vmem:[#allocation0 + $0xf] ss:$-1 sm:$0xff]  ;;  %v83_v27 = vld [vmem:[#allocation0 + $0x1f] ss:$-1 sm:$0xff]  ;;  %122 = vst [vmem:[#allocation1 + $0x20] sm:$0xff] %v121_v20 }
   0xa   :  { %v97_v28 = vld [vmem:[#allocation0 + $0x2f] ss:$-1 sm:$0xff]  ;;  %136 = vst [vmem:[#allocation1 + $0x28] sm:$0xff] %v135_v21  ;;  %v70_v29 = vrot.slane %v69_v26, 1  ;;  %v84_v30 = vrot.slane %v83_v27, 1  ;;  %150 = vst [vmem:[#allocation1 + $0x30] sm:$0xff] %v149_v24 }
   0xb   :  { %v98_v31 = vrot.slane %v97_v28, 1  ;;  %v111_v32 = vld [vmem:[#allocation0 + $0x3f] ss:$-1 sm:$0xff]  ;;  %164 = vst [vmem:[#allocation1 + $0x38] sm:$0xff] %v163_v25  ;;  %v125_v34 = vld [vmem:[#allocation0 + $0x4f] ss:$-1 sm:$0xff] }
   0xc   :  { %v112_v33 = vrot.slane %v111_v32, 1  ;;  %v139_v35 = vld [vmem:[#allocation0 + $0x5f] ss:$-1 sm:$0xff]  ;;  %74 = vst.msk [vmem:[#allocation1] sm:$0xff] %vm73_vm0, %v70_v29  ;;  %88 = vst.msk [vmem:[#allocation1 + $0x8] sm:$0xff] %vm73_vm0, %v84_v30  ;;  %v126_v36 = vrot.slane %v125_v34, 1 }
   0xd   :  { %102 = vst.msk [vmem:[#allocation1 + $0x10] sm:$0xff] %vm73_vm0, %v98_v31  ;;  %v140_v37 = vrot.slane %v139_v35, 1  ;;  %v153_v38 = vld [vmem:[#allocation0 + $0x6f] ss:$-1 sm:$0xff]  ;;  %v167_v39 = vld [vmem:[#allocation0 + $0x7f] ss:$-1 sm:$0xff] }
   0xe   :  { %116 = vst.msk [vmem:[#allocation1 + $0x18] sm:$0xff] %vm73_vm0, %v112_v33  ;;  %v154_v40 = vrot.slane %v153_v38, 1  ;;  %v168_v41 = vrot.slane %v167_v39, 1  ;;  %130 = vst.msk [vmem:[#allocation1 + $0x20] sm:$0xff] %vm73_vm0, %v126_v36 }
   0xf   :  { %144 = vst.msk [vmem:[#allocation1 + $0x28] sm:$0xff] %vm73_vm0, %v140_v37 }
  0x10   :  { %158 = vst.msk [vmem:[#allocation1 + $0x30] sm:$0xff] %vm73_vm0, %v154_v40  ;;  %172 = vst.msk [vmem:[#allocation1 + $0x38] sm:$0xff] %vm73_vm0, %v168_v41 }
  0x13   :  { %v214_v42 = vld [vmem:[#allocation1] sm:$0xff]  ;;  %v216_v43 = vld [vmem:[#allocation1 + $0x8] sm:$0xff] }
  0x14   :  { %v218_v44 = vld [vmem:[#allocation1 + $0x10] sm:$0xff]  ;;  %215 = vst [vmem:[%s330_s1] sm:$0xff] %v214_v42  ;;  %217 = vst [vmem:[%s330_s1 + $0x8] sm:$0xff] %v216_v43 }
  0x15   :  { %219 = vst [vmem:[%s330_s1 + $0x10] sm:$0xff] %v218_v44  ;;  %v220_v45 = vld [vmem:[#allocation1 + $0x18] sm:$0xff]  ;;  %v222_v46 = vld [vmem:[#allocation1 + $0x20] sm:$0xff] }
  0x16   :  { %221 = vst [vmem:[%s330_s1 + $0x18] sm:$0xff] %v220_v45  ;;  %v224_v47 = vld [vmem:[#allocation1 + $0x28] sm:$0xff]  ;;  %223 = vst [vmem:[%s330_s1 + $0x20] sm:$0xff] %v222_v46 }
  0x17   :  { %225 = vst [vmem:[%s330_s1 + $0x28] sm:$0xff] %v224_v47  ;;  %v226_v48 = vld [vmem:[#allocation1 + $0x30] sm:$0xff]  ;;  %v228_v49 = vld [vmem:[#allocation1 + $0x38] sm:$0xff] }
  0x18   :  { %227 = vst [vmem:[%s330_s1 + $0x30] sm:$0xff] %v226_v48  ;;  %229 = vst [vmem:[%s330_s1 + $0x38] sm:$0xff] %v228_v49 }

// kernel: spectral_conv2d.1
= control target key start
LH: loop header
LB: loop body
LE: loop exit
PB: predicated region body
PF: predicated region fallthrough
CT: control target
= control target key end

     0   :  { %s4717_s9 = smov 0   ;;  %s4719_s10 = smov 0   ;;  %s5519_s0 = inlined_call_operand.vmem [shape: f32[2,2,16,2,4], index: 0, kind: input, shape index: {}]   ;;  %s5520_s1 = inlined_call_operand.vmem [shape: f32[2,2,16,4,4], index: 1, kind: input, shape index: {}]   ;;  %s5521_s2 = inlined_call_operand.vmem [shape: f32[2,2,16,2,4], index: 2, kind: output, shape index: {}]  }
   0x1   :  { %s4721_s11 = smov 0  }
   0x2 LB: > { %s24_s12 = sadd.s32 1, %s4694_s10  ;;  %p4158_p0 = scmp.ge.s32.totalorder %s4698_s11, 1  ;;  %s4698_s11 = sphi %s4721_s11, %s12_s11   ;;  %s4694_s10 = sphi %s4719_s10, %s5532_s10   ;;  %s4690_s9 = sphi %s4717_s9, %s5531_s9  }
   0x3   : > { %p26_p1 = scmp.ge.s32.totalorder %s24_s12, 2  ;;  %p150_p2 = scmp.lt.s32.totalorder %s4698_s11, 3 }
   0x5   : > { %s5534_s12 = smov (%p26_p1, %s24_s12), 0  ;;  %p151_p3 = pnand %p4158_p0, %p150_p2 }
   0x7   : > { %154 = sbr.rel (%p151_p3) target bundleno = 331 (0x14b), region = 28 }
   0xe   : > { %p190_p4 = scmp.lt.s32.totalorder %s4690_s9, 1  ;;  %v4700_v0 = vmov 0.0   ;;  %vm4701_vm0 = vmmov 0   ;;  %vm289_vm1 = vcmask 1043456   ;;  %vm285_vm2 = vcmask 31744  }
   0xf   : > { %4410 = vmatprep.subr.mxu0 %v4700_v0  ;;  %4415 = vmatprep.subr.mxu1 %v4700_v0  ;;  %vm3983_vm3 = vcmask 25600  }
  0x10   : > { %s5536_s9 = smov (!%p190_p4, %s4690_s9), 1  ;;  %4412 = vmatprep.mubr.msk.f32.mxu0 %vm4701_vm0, %v4700_v0  ;;  %4417 = vmatprep.mubr.msk.f32.mxu1 %vm4701_vm0, %v4700_v0 }
  0x11   : > { %s4312_s13 = sshll.u32 %s5536_s9, 7  ;;  %s4311_s14 = sshll.u32 %s5536_s9, 6 }
  0x12   : > { %s4748_s17 = scalar_lea.vmem %s5520_s1, %s4312_s13  ;;  %s4755_s20 = scalar_lea.vmem %s5519_s0, %s4311_s14 }
  0x13   : > { %v4758_v1 = vld [vmem:[%s4748_s17] sm:$0xf]  ;;  %v4761_v2 = vld [vmem:[%s4748_s17 + $0x4] sm:$0xf]  ;;  %v4777_v5 = vld [vmem:[%s4748_s17 + $0x8] sm:$0xf]  ;;  %s5348_s23 = scalar_lea.vmem %s5521_s2, %s4311_s14 }
  0x14   : > { %4411 = vmatpush3.msk.msra.mxu0 %vm289_vm1, %v4758_v1  ;;  %4416 = vmatpush3.msk.msra.mxu1 %vm289_vm1, %v4761_v2  ;;  %v4768_v3 = vld [vmem:[%s4755_s20] sm:$0x3]  ;;  %v4773_v4 = vld [vmem:[%s4755_s20 + $0x2] sm:$0x3]  ;;  %v4783_v6 = vld [vmem:[%s4748_s17 + $0xc] sm:$0xf] }
  0x15   : > { %4413 = vmatmul.mubr.msk.f32.vlgmr.msra.gmra.mrb[0].mxu0 %vm285_vm2, %v4768_v3  ;;  %4420 = vmatprep.subr.mxu0 %v4700_v0  ;;  %v4786_v7 = vld [vmem:[%s4755_s20 + $0x4] sm:$0x3]  ;;  %v4793_v8 = vld [vmem:[%s4755_s20 + $0x6] sm:$0x3]  ;;  %v4800_v9 = vld [vmem:[%s4748_s17 + $0x10] sm:$0xf] }
  0x16   : > { %4418 = vmatmul.mubr.msk.f32.vlgmr.msra.gmra.mrb[0].mxu1 %vm285_vm2, %v4773_v4  ;;  %4425 = vmatprep.subr.mxu1 %v4700_v0  ;;  %v4803_v10 = vld [vmem:[%s4748_s17 + $0x14] sm:$0xf]  ;;  %v4812_v11 = vld [vmem:[%s4755_s20 + $0x8] sm:$0x3]  ;;  %v4819_v12 = vld [vmem:[%s4755_s20 + $0xa] sm:$0x3] }
  0x17   : > { %4421 = vmatpush3.msk.msra.mxu0 %vm289_vm1, %v4777_v5  ;;  %4426 = vmatpush3.msk.msra.mxu1 %vm289_vm1, %v4783_v6  ;;  %v4826_v13 = vld [vmem:[%s4748_s17 + $0x18] sm:$0xf]  ;;  %v4829_v14 = vld [vmem:[%s4748_s17 + $0x1c] sm:$0xf]  ;;  %v4838_v15 = vld [vmem:[%s4755_s20 + $0xc] sm:$0x3] }
  0x18   : > { %4422 = vmatprep.mubr.msk.f32.mxu0 %vm4701_vm0, %v4700_v0  ;;  %4427 = vmatprep.mubr.msk.f32.mxu1 %vm4701_vm0, %v4700_v0  ;;  %v4845_v16 = vld [vmem:[%s4755_s20 + $0xe] sm:$0x3]  ;;  %v4852_v17 = vld [vmem:[%s4748_s17 + $0x20] sm:$0xf]  ;;  %v4855_v18 = vld [vmem:[%s4748_s17 + $0x24] sm:$0xf] }
  0x19   : > { %4423 = vmatmul.mubr.msk.f32.vlgmr.msra.gmra.mrb[2].mxu0 %vm285_vm2, %v4786_v7  ;;  %4430 = vmatprep.subr.mxu0 %v4700_v0  ;;  %v4864_v19 = vld [vmem:[%s4755_s20 + $0x10] sm:$0x3]  ;;  %v4871_v20 = vld [vmem:[%s4755_s20 + $0x12] sm:$0x3]  ;;  %v4878_v21 = vld [vmem:[%s4748_s17 + $0x28] sm:$0xf] }
  0x1a   : > { %4428 = vmatmul.mubr.msk.f32.vlgmr.msra.gmra.mrb[2].mxu1 %vm285_vm2, %v4793_v8  ;;  %4435 = vmatprep.subr.mxu1 %v4700_v0  ;;  %v4881_v22 = vld [vmem:[%s4748_s17 + $0x2c] sm:$0xf]  ;;  %v4890_v23 = vld [vmem:[%s4755_s20 + $0x14] sm:$0x3]  ;;  %v4897_v24 = vld [vmem:[%s4755_s20 + $0x16] sm:$0x3] }
  0x1b   : > { %4431 = vmatpush3.msk.msra.mxu0 %vm289_vm1, %v4800_v9  ;;  %4436 = vmatpush3.msk.msra.mxu1 %vm289_vm1, %v4803_v10  ;;  %v4904_v25 = vld [vmem:[%s4748_s17 + $0x30] sm:$0xf]  ;;  %v4907_v26 = vld [vmem:[%s4748_s17 + $0x34] sm:$0xf]  ;;  %v4916_v27 = vld [vmem:[%s4755_s20 + $0x18] sm:$0x3] }
  0x1c   : > { %4432 = vmatprep.mubr.msk.f32.mxu0 %vm4701_vm0, %v4700_v0  ;;  %4437 = vmatprep.mubr.msk.f32.mxu1 %vm4701_vm0, %v4700_v0  ;;  %v4923_v28 = vld [vmem:[%s4755_s20 + $0x1a] sm:$0x3]  ;;  %v4933_v30 = vld [vmem:[%s4748_s17 + $0x3c] sm:$0xf]  ;;  %v4952_v33 = vld [vmem:[%s4748_s17 + $0x40] sm:$0xf] }
  0x1d   : > { %4433 = vmatmul.mubr.msk.f32.vlgmr.msra.gmra.mrb[4].mxu0 %vm285_vm2, %v4812_v11  ;;  %4440 = vmatprep.subr.mxu0 %v4700_v0  ;;  %v4930_v29 = vld [vmem:[%s4748_s17 + $0x38] sm:$0xf]  ;;  %5525 = vst [vmem:[#allocation2_spill] sm:$0xff] %v4933_v30  ;;  %v4942_v31 = vld [vmem:[%s4755_s20 + $0x1c] sm:$0x3] }
  0x1e   : > { %4438 = vmatmul.mubr.msk.f32.vlgmr.msra.gmra.mrb[4].mxu1 %vm285_vm2, %v4819_v12  ;;  %4445 = vmatprep.subr.mxu1 %v4700_v0  ;;  %5526 = vst [vmem:[#allocation3_spill] sm:$0xff] %v4942_v31  ;;  %v4949_v32 = vld [vmem:[%s4755_s20 + $0x1e] sm:$0x3]  ;;  %v4955_v34 = vld [vmem:[%s4748_s17 + $0x44] sm:$0xf] }
  0x1f   : > { %4441 = vmatpush3.msk.msra.mxu0 %vm289_vm1, %v4826_v13  ;;  %4446 = vmatpush3.msk.msra.mxu1 %vm289_vm1, %v4829_v14  ;;  %5527 = vst [vmem:[#allocation4_spill] sm:$0xff] %v4949_v32  ;;  %v4965_v35 = vld [vmem:[%s4755_s20 + $0x20] sm:$0x3]  ;;  %v4971_v36 = vld [vmem:[%s4755_s20 + $0x22] sm:$0x3] }
  0x20   : > { %4442 = vmatprep.mubr.msk.f32.mxu0 %vm4701_vm0, %v4700_v0  ;;  %4447 = vmatprep.mubr.msk.f32.mxu1 %vm4701_vm0, %v4700_v0  ;;  %v4982_v37 = vld [vmem:[%s4748_s17 + $0x48] sm:$0xf]  ;;  %v4985_v38 = vld [vmem:[%s4748_s17 + $0x4c] sm:$0xf]  ;;  %v4994_v39 = vld [vmem:[%s4755_s20 + $0x24] sm:$0x3] }
  0x21   : > { %4443 = vmatmul.mubr.msk.f32.vlgmr.msra.gmra.mrb[6].mxu0 %vm285_vm2, %v4838_v15  ;;  %4450 = vmatprep.subr.mxu0 %v4700_v0  ;;  %v5001_v40 = vld [vmem:[%s4755_s20 + $0x26] sm:$0x3]  ;;  %v5008_v41 = vld [vmem:[%s4748_s17 + $0x50] sm:$0xf]  ;;  %v5011_v42 = vld [vmem:[%s4748_s17 + $0x54] sm:$0xf] }
  0x22   : > { %4448 = vmatmul.mubr.msk.f32.vlgmr.msra.gmra.mrb[6].mxu1 %vm285_vm2, %v4845_v16  ;;  %4455 = vmatprep.subr.mxu1 %v4700_v0  ;;  %v5020_v43 = vld [vmem:[%s4755_s20 + $0x28] sm:$0x3]  ;;  %v5027_v44 = vld [vmem:[%s4755_s20 + $0x2a] sm:$0x3]  ;;  %v5034_v45 = vld [vmem:[%s4748_s17 + $0x58] sm:$0xf] }
  0x23   : > { %4451 = vmatpush3.msk.msra.mxu0 %vm289_vm1, %v4852_v17  ;;  %4456 = vmatpush3.msk.msra.mxu1 %vm289_vm1, %v4855_v18  ;;  %v5037_v46 = vld [vmem:[%s4748_s17 + $0x5c] sm:$0xf]  ;;  %v5046_v47 = vld [vmem:[%s4755_s20 + $0x2c] sm:$0x3]  ;;  %v5053_v48 = vld [vmem:[%s4755_s20 + $0x2e] sm:$0x3] }
  0x24   : > { %4452 = vmatprep.mubr.msk.f32.mxu0 %vm4701_vm0, %v4700_v0  ;;  %4457 = vmatprep.mubr.msk.f32.mxu1 %vm4701_vm0, %v4700_v0  ;;  %v5060_v49 = vld [vmem:[%s4748_s17 + $0x60] sm:$0xf]  ;;  %v5063_v50 = vld [vmem:[%s4748_s17 + $0x64] sm:$0xf]  ;;  %v5072_v51 = vld [vmem:[%s4755_s20 + $0x30] sm:$0x3] }
  0x25   : > { %4453 = vmatmul.mubr.msk.f32.vlgmr.msra.gmra.mrb[8].mxu0 %vm285_vm2, %v4864_v19  ;;  %4460 = vmatprep.subr.mxu0 %v4700_v0  ;;  %v5079_v52 = vld [vmem:[%s4755_s20 + $0x32] sm:$0x3]  ;;  %v5086_v53 = vld [vmem:[%s4748_s17 + $0x68] sm:$0xf]  ;;  %v5089_v54 = vld [vmem:[%s4748_s17 + $0x6c] sm:$0xf] }
  0x26   : > { %4458 = vmatmul.mubr.msk.f32.vlgmr.msra.gmra.mrb[8].mxu1 %vm285_vm2, %v4871_v20  ;;  %4465 = vmatprep.subr.mxu1 %v4700_v0  ;;  %v5098_v55 = vld [vmem:[%s4755_s20 + $0x34] sm:$0x3]  ;;  %v5105_v56 = vld [vmem:[%s4755_s20 + $0x36] sm:$0x3]  ;;  %v5112_v57 = vld [vmem:[%s4748_s17 + $0x70] sm:$0xf] }
  0x27   : > { %4461 = vmatpush3.msk.msra.mxu0 %vm289_vm1, %v4878_v21  ;;  %4466 = vmatpush3.msk.msra.mxu1 %vm289_vm1, %v4881_v22  ;;  %v5115_v58 = vld [vmem:[%s4748_s17 + $0x74] sm:$0xf]  ;;  %v5124_v59 = vld [vmem:[%s4755_s20 + $0x38] sm:$0x3]  ;;  %v5131_v60 = vld [vmem:[%s4755_s20 + $0x3a] sm:$0x3] }
  0x28   : > { %4462 = vmatprep.mubr.msk.f32.mxu0 %vm4701_vm0, %v4700_v0  ;;  %4467 = vmatprep.mubr.msk.f32.mxu1 %vm4701_vm0, %v4700_v0  ;;  %v5138_v61 = vld [vmem:[%s4748_s17 + $0x78] sm:$0xf]  ;;  %v5141_v62 = vld [vmem:[%s4748_s17 + $0x7c] sm:$0xf] }
  0x29   : > { %4463 = vmatmul.mubr.msk.f32.vlgmr.msra.gmra.mrb[10].mxu0 %vm285_vm2, %v4890_v23  ;;  %4470 = vmatprep.subr.mxu0 %v4700_v0  ;;  %v5150_v63 = vld [vmem:[%s4755_s20 + $0x3c] sm:$0x3] }
  0x2a   : > { %4468 = vmatmul.mubr.msk.f32.vlgmr.msra.gmra.mrb[10].mxu1 %vm285_vm2, %v4897_v24  ;;  %4475 = vmatprep.subr.mxu1 %v4700_v0 }
  0x2b   : > { %4471 = vmatpush3.msk.msra.mxu0 %vm289_vm1, %v4904_v25  ;;  %4476 = vmatpush3.msk.msra.mxu1 %vm289_vm1, %v4907_v26 }
  0x2c   : > { %4472 = vmatprep.mubr.msk.f32.mxu0 %vm4701_vm0, %v4700_v0  ;;  %4477 = vmatprep.mubr.msk.f32.mxu1 %vm4701_vm0, %v4700_v0 }
  0x2d   : > { %4473 = vmatmul.mubr.msk.f32.vlgmr.msra.gmra.mrb[12].mxu0 %vm285_vm2, %v4916_v27  ;;  %4480 = vmatprep.subr.mxu0 %v4700_v0 }
  0x2e   : > { %4478 = vmatmul.mubr.msk.f32.vlgmr.msra.gmra.mrb[12].mxu1 %vm285_vm2, %v4923_v28  ;;  %4485 = vmatprep.subr.mxu1 %v4700_v0 }
  0x2f   : > { %4481 = vmatpush3.msk.msra.mxu0 %vm289_vm1, %v4930_v29  ;;  %4486 = vmatpush3.msk.msra.mxu1 %vm289_vm1, %v4933_v30  ;;  %v5161_v30 = vld [vmem:[%s4755_s20 + $0x3e] sm:$0x3] }
  0x30   : > { %4482 = vmatprep.mubr.msk.f32.mxu0 %vm4701_vm0, %v4700_v0  ;;  %4487 = vmatprep.mubr.msk.f32.mxu1 %vm4701_vm0, %v4700_v0 }
  0x31   : > { %4483 = vmatmul.mubr.msk.f32.vlgmr.msra.gmra.mrb[14].mxu0 %vm285_vm2, %v4942_v31  ;;  %4490 = vmatprep.subr.mxu0 %v4700_v0  ;;  %v2736_v31 = vadd.f32 %v4955_v34, %v4761_v2  ;;  %v2720_v2 = vadd.f32 %v4971_v36, %v4773_v4  ;;  %v2722_v4 = vadd.f32 %v5001_v40, %v4793_v8 }
  0x32   : > { %4488 = vmatmul.mubr.msk.f32.vlgmr.msra.gmra.mrb[14].mxu1 %vm285_vm2, %v4949_v32  ;;  %4495 = vmatprep.subr.mxu1 %v4700_v0  ;;  %v2735_v32 = vadd.f32 %v4952_v33, %v4758_v1  ;;  %v2719_v1 = vadd.f32 %v4965_v35, %v4768_v3  ;;  %v2721_v3 = vadd.f32 %v4994_v39, %v4786_v7 }
  0x33   : > { %4491 = vmatpush3.msk.msra.mxu0 %vm289_vm1, %v4952_v33  ;;  %4496 = vmatpush3.msk.msra.mxu1 %vm289_vm1, %v4955_v34  ;;  %v2737_v33 = vadd.f32 %v4982_v37, %v4777_v5  ;;  %v2738_v34 = vadd.f32 %v4985_v38, %v4783_v6  ;;  %v2739_v5 = vadd.f32 %v5008_v41, %v4800_v9 }
  0x34   : > { %4492 = vmatprep.mubr.msk.f32.mxu0 %vm4701_vm0, %v4700_v0  ;;  %4497 = vmatprep.mubr.msk.f32.mxu1 %vm4701_vm0, %v4700_v0  ;;  %v2740_v6 = vadd.f32 %v5011_v42, %v4803_v10  ;;  %v2723_v7 = vadd.f32 %v5020_v43, %v4812_v11  ;;  %v2724_v8 = vadd.f32 %v5027_v44, %v4819_v12 }
  0x35   : > { %4493 = vmatmul.mubr.msk.f32.vlgmr.msra.gmra.mrb[16].mxu0 %vm285_vm2, %v4965_v35  ;;  %4500 = vmatprep.subr.mxu0 %v4700_v0  ;;  %v2741_v9 = vadd.f32 %v5034_v45, %v4826_v13  ;;  %v2742_v10 = vadd.f32 %v5037_v46, %v4829_v14  ;;  %v2725_v11 = vadd.f32 %v5046_v47, %v4838_v15 }
  0x36   : > { %4498 = vmatmul.mubr.msk.f32.vlgmr.msra.gmra.mrb[16].mxu1 %vm285_vm2, %v4971_v36  ;;  %4505 = vmatprep.subr.mxu1 %v4700_v0  ;;  %v2726_v12 = vadd.f32 %v5053_v48, %v4845_v16  ;;  %v2743_v13 = vadd.f32 %v5060_v49, %v4852_v17  ;;  %v2744_v14 = vadd.f32 %v5063_v50, %v4855_v18 }
  0x37   : > { %4501 = vmatpush3.msk.msra.mxu0 %vm289_vm1, %v4982_v37  ;;  %4506 = vmatpush3.msk.msra.mxu1 %vm289_vm1, %v4985_v38  ;;  %v2727_v15 = vadd.f32 %v5072_v51, %v4864_v19  ;;  %v2728_v16 = vadd.f32 %v5079_v52, %v4871_v20  ;;  %v2745_v17 = vadd.f32 %v5086_v53, %v4878_v21 }
  0x38   : > { %4502 = vmatprep.mubr.msk.f32.mxu0 %vm4701_vm0, %v4700_v0  ;;  %4507 = vmatprep.mubr.msk.f32.mxu1 %vm4701_vm0, %v4700_v0  ;;  %v2746_v18 = vadd.f32 %v5089_v54, %v4881_v22  ;;  %v2729_v19 = vadd.f32 %v5098_v55, %v4890_v23  ;;  %v2730_v20 = vadd.f32 %v5105_v56, %v4897_v24 }
  0x39   : > { %4503 = vmatmul.mubr.msk.f32.vlgmr.msra.gmra.mrb[18].mxu0 %vm285_vm2, %v4994_v39  ;;  %4510 = vmatprep.subr.mxu0 %v4700_v0  ;;  %v2747_v21 = vadd.f32 %v5112_v57, %v4904_v25  ;;  %v2748_v22 = vadd.f32 %v5115_v58, %v4907_v26  ;;  %v2731_v23 = vadd.f32 %v5124_v59, %v4916_v27  ;;  %v5528_v26 = vld [vmem:[#allocation2_spill] sm:$0xff]  ;;  %v5529_v27 = vld [vmem:[#allocation3_spill] sm:$0xff] }
  0x3a   : > { %4508 = vmatmul.mubr.msk.f32.vlgmr.msra.gmra.mrb[18].mxu1 %vm285_vm2, %v5001_v40  ;;  %4515 = vmatprep.subr.mxu1 %v4700_v0  ;;  %v2732_v24 = vadd.f32 %v5131_v60, %v4923_v28  ;;  %v2749_v25 = vadd.f32 %v5138_v61, %v4930_v29  ;;  %v2733_v28 = vadd.f32 %v5150_v63, %v5529_v27  ;;  %v5530_v29 = vld [vmem:[#allocation4_spill] sm:$0xff] }
  0x3b   : > { %4511 = vmatpush3.msk.msra.mxu0 %vm289_vm1, %v5008_v41  ;;  %4516 = vmatpush3.msk.msra.mxu1 %vm289_vm1, %v5011_v42 }
  0x3c   : > { %4512 = vmatprep.mubr.msk.f32.mxu0 %vm4701_vm0, %v4700_v0  ;;  %4517 = vmatprep.mubr.msk.f32.mxu1 %vm4701_vm0, %v4700_v0 }
  0x3d   : > { %4513 = vmatmul.mubr.msk.f32.vlgmr.msra.gmra.mrb[20].mxu0 %vm285_vm2, %v5020_v43  ;;  %4520 = vmatprep.subr.mxu0 %v4700_v0 }
  0x3e   : > { %4518 = vmatmul.mubr.msk.f32.vlgmr.msra.gmra.mrb[20].mxu1 %vm285_vm2, %v5027_v44  ;;  %4525 = vmatprep.subr.mxu1 %v4700_v0 }
  0x3f   : > { %4521 = vmatpush3.msk.msra.mxu0 %vm289_vm1, %v5034_v45  ;;  %4526 = vmatpush3.msk.msra.mxu1 %vm289_vm1, %v5037_v46 }
  0x40   : > { %4522 = vmatprep.mubr.msk.f32.mxu0 %vm4701_vm0, %v4700_v0  ;;  %4527 = vmatprep.mubr.msk.f32.mxu1 %vm4701_vm0, %v4700_v0 }
  0x41   : > { %4523 = vmatmul.mubr.msk.f32.vlgmr.msra.gmra.mrb[22].mxu0 %vm285_vm2, %v5046_v47  ;;  %4530 = vmatprep.subr.mxu0 %v4700_v0 }
  0x42   : > { %4528 = vmatmul.mubr.msk.f32.vlgmr.msra.gmra.mrb[22].mxu1 %vm285_vm2, %v5053_v48  ;;  %4535 = vmatprep.subr.mxu1 %v4700_v0 }
  0x43   : > { %4531 = vmatpush3.msk.msra.mxu0 %vm289_vm1, %v5060_v49  ;;  %4536 = vmatpush3.msk.msra.mxu1 %vm289_vm1, %v5063_v50 }
  0x44   : > { %4532 = vmatprep.mubr.msk.f32.mxu0 %vm4701_vm0, %v4700_v0  ;;  %4537 = vmatprep.mubr.msk.f32.mxu1 %vm4701_vm0, %v4700_v0 }
  0x45   : > { %4533 = vmatmul.mubr.msk.f32.vlgmr.msra.gmra.mrb[24].mxu0 %vm285_vm2, %v5072_v51  ;;  %4540 = vmatprep.subr.mxu0 %v4700_v0 }
  0x46   : > { %4538 = vmatmul.mubr.msk.f32.vlgmr.msra.gmra.mrb[24].mxu1 %vm285_vm2, %v5079_v52  ;;  %4545 = vmatprep.subr.mxu1 %v4700_v0 }
  0x47   : > { %4541 = vmatpush3.msk.msra.mxu0 %vm289_vm1, %v5086_v53  ;;  %4546 = vmatpush3.msk.msra.mxu1 %vm289_vm1, %v5089_v54 }
  0x48   : > { %4542 = vmatprep.mubr.msk.f32.mxu0 %vm4701_vm0, %v4700_v0  ;;  %4547 = vmatprep.mubr.msk.f32.mxu1 %vm4701_vm0, %v4700_v0 }
  0x49   : > { %4543 = vmatmul.mubr.msk.f32.vlgmr.msra.gmra.mrb[26].mxu0 %vm285_vm2, %v5098_v55  ;;  %4550 = vmatprep.subr.mxu0 %v4700_v0 }
  0x4a   : > { %4548 = vmatmul.mubr.msk.f32.vlgmr.msra.gmra.mrb[26].mxu1 %vm285_vm2, %v5105_v56  ;;  %4555 = vmatprep.subr.mxu1 %v4700_v0 }
  0x4b   : > { %4551 = vmatpush3.msk.msra.mxu0 %vm289_vm1, %v5112_v57  ;;  %4556 = vmatpush3.msk.msra.mxu1 %vm289_vm1, %v5115_v58 }
  0x4c   : > { %4552 = vmatprep.mubr.msk.f32.mxu0 %vm4701_vm0, %v4700_v0  ;;  %4557 = vmatprep.mubr.msk.f32.mxu1 %vm4701_vm0, %v4700_v0 }
  0x4d   : > { %4553 = vmatmul.mubr.msk.f32.vlgmr.msra.gmra.mrb[28].mxu0 %vm285_vm2, %v5124_v59  ;;  %4560 = vmatprep.subr.mxu0 %v4700_v0 }
  0x4e   : > { %4558 = vmatmul.mubr.msk.f32.vlgmr.msra.gmra.mrb[28].mxu1 %vm285_vm2, %v5131_v60  ;;  %4565 = vmatprep.subr.mxu1 %v4700_v0 }
  0x4f   : > { %4561 = vmatpush3.msk.msra.mxu0 %vm289_vm1, %v5138_v61  ;;  %4566 = vmatpush3.msk.msra.mxu1 %vm289_vm1, %v5141_v62 }
  0x50   : > { %4562 = vmatprep.mubr.msk.f32.mxu0 %vm4701_vm0, %v4700_v0  ;;  %4567 = vmatprep.mubr.msk.f32.mxu1 %vm4701_vm0, %v4700_v0 }
  0x51   : > { %4563 = vmatmul.mubr.msk.f32.vlgmr.msra.gmra.mrb[30].mxu0 %vm285_vm2, %v5150_v63  ;;  %4570 = vmatprep.subr.mxu0 %v4700_v0 }
  0x52   : > { %4568 = vmatmul.mubr.msk.f32.vlgmr.msra.gmra.mrb[30].mxu1 %vm285_vm2, %v5161_v30  ;;  %4575 = vmatprep.subr.mxu1 %v4700_v0 }
  0x53   : > { %4571 = vmatpush3.msk.msra.mxu0 %vm289_vm1, %v2735_v32  ;;  %4576 = vmatpush3.msk.msra.mxu1 %vm289_vm1, %v2736_v31  ;;  %v2750_v31 = vadd.f32 %v5141_v62, %v5528_v26  ;;  %v2734_v32 = vadd.f32 %v5161_v30, %v5530_v29 }
  0x54   : > { %4572 = vmatprep.mubr.msk.f32.mxu0 %vm4701_vm0, %v4700_v0  ;;  %4577 = vmatprep.mubr.msk.f32.mxu1 %vm4701_vm0, %v4700_v0 }
  0x55   : > { %4573 = vmatmul.mubr.msk.f32.vlgmr.msra.gmra.mrb[32].mxu0 %vm285_vm2, %v2719_v1  ;;  %4580 = vmatprep.subr.mxu0 %v4700_v0 }
  0x56   : > { %4578 = vmatmul.mubr.msk.f32.vlgmr.msra.gmra.mrb[32].mxu1 %vm285_vm2, %v2720_v2  ;;  %4585 = vmatprep.subr.mxu1 %v4700_v0 }
  0x57   : > { %4581 = vmatpush3.msk.msra.mxu0 %vm289_vm1, %v2737_v33  ;;  %4586 = vmatpush3.msk.msra.mxu1 %vm289_vm1, %v2738_v34 }
  0x58   : > { %4582 = vmatprep.mubr.msk.f32.mxu0 %vm4701_vm0, %v4700_v0  ;;  %4587 = vmatprep.mubr.msk.f32.mxu1 %vm4701_vm0, %v4700_v0 }
  0x59   : > { %4583 = vmatmul.mubr.msk.f32.vlgmr.msra.gmra.mrb[34].mxu0 %vm285_vm2, %v2721_v3  ;;  %4590 = vmatprep.subr.mxu0 %v4700_v0 }
  0x5a   : > { %4588 = vmatmul.mubr.msk.f32.vlgmr.msra.gmra.mrb[34].mxu1 %vm285_vm2, %v2722_v4  ;;  %4595 = vmatprep.subr.mxu1 %v4700_v0 }
  0x5b   : > { %4591 = vmatpush3.msk.msra.mxu0 %vm289_vm1, %v2739_v5  ;;  %4596 = vmatpush3.msk.msra.mxu1 %vm289_vm1, %v2740_v6 }
  0x5c   : > { %4592 = vmatprep.mubr.msk.f32.mxu0 %vm4701_vm0, %v4700_v0  ;;  %4597 = vmatprep.mubr.msk.f32.mxu1 %vm4701_vm0, %v4700_v0 }
  0x5d   : > { %4593 = vmatmul.mubr.msk.f32.vlgmr.msra.gmra.mrb[36].mxu0 %vm285_vm2, %v2723_v7  ;;  %4600 = vmatprep.subr.mxu0 %v4700_v0 }
  0x5e   : > { %4598 = vmatmul.mubr.msk.f32.vlgmr.msra.gmra.mrb[36].mxu1 %vm285_vm2, %v2724_v8  ;;  %4605 = vmatprep.subr.mxu1 %v4700_v0 }
  0x5f   : > { %4601 = vmatpush3.msk.msra.mxu0 %vm289_vm1, %v2741_v9  ;;  %4606 = vmatpush3.msk.msra.mxu1 %vm289_vm1, %v2742_v10 }
  0x60   : > { %4602 = vmatprep.mubr.msk.f32.mxu0 %vm4701_vm0, %v4700_v0  ;;  %4607 = vmatprep.mubr.msk.f32.mxu1 %vm4701_vm0, %v4700_v0 }
  0x61   : > { %4603 = vmatmul.mubr.msk.f32.vlgmr.msra.gmra.mrb[38].mxu0 %vm285_vm2, %v2725_v11  ;;  %4610 = vmatprep.subr.mxu0 %v4700_v0 }
  0x62   : > { %4608 = vmatmul.mubr.msk.f32.vlgmr.msra.gmra.mrb[38].mxu1 %vm285_vm2, %v2726_v12  ;;  %4615 = vmatprep.subr.mxu1 %v4700_v0 }
  0x63   : > { %4611 = vmatpush3.msk.msra.mxu0 %vm289_vm1, %v2743_v13  ;;  %4616 = vmatpush3.msk.msra.mxu1 %vm289_vm1, %v2744_v14 }
  0x64   : > { %4612 = vmatprep.mubr.msk.f32.mxu0 %vm4701_vm0, %v4700_v0  ;;  %4617 = vmatprep.mubr.msk.f32.mxu1 %vm4701_vm0, %v4700_v0 }
  0x65   : > { %4613 = vmatmul.mubr.msk.f32.vlgmr.msra.gmra.mrb[40].mxu0 %vm285_vm2, %v2727_v15  ;;  %4620 = vmatprep.subr.mxu0 %v4700_v0 }
  0x66   : > { %4618 = vmatmul.mubr.msk.f32.vlgmr.msra.gmra.mrb[40].mxu1 %vm285_vm2, %v2728_v16  ;;  %4625 = vmatprep.subr.mxu1 %v4700_v0 }
  0x67   : > { %4621 = vmatpush3.msk.msra.mxu0 %vm289_vm1, %v2745_v17  ;;  %4626 = vmatpush3.msk.msra.mxu1 %vm289_vm1, %v2746_v18 }
  0x68   : > { %4622 = vmatprep.mubr.msk.f32.mxu0 %vm4701_vm0, %v4700_v0  ;;  %4627 = vmatprep.mubr.msk.f32.mxu1 %vm4701_vm0, %v4700_v0 }
  0x69   : > { %4623 = vmatmul.mubr.msk.f32.vlgmr.msra.gmra.mrb[42].mxu0 %vm285_vm2, %v2729_v19  ;;  %4630 = vmatprep.subr.mxu0 %v4700_v0 }
  0x6a   : > { %4628 = vmatmul.mubr.msk.f32.vlgmr.msra.gmra.mrb[42].mxu1 %vm285_vm2, %v2730_v20  ;;  %4635 = vmatprep.subr.mxu1 %v4700_v0 }
  0x6b   : > { %4631 = vmatpush3.msk.msra.mxu0 %vm289_vm1, %v2747_v21  ;;  %4636 = vmatpush3.msk.msra.mxu1 %vm289_vm1, %v2748_v22 }
  0x6c   : > { %4632 = vmatprep.mubr.msk.f32.mxu0 %vm4701_vm0, %v4700_v0  ;;  %4637 = vmatprep.mubr.msk.f32.mxu1 %vm4701_vm0, %v4700_v0 }
  0x6d   : > { %4633 = vmatmul.mubr.msk.f32.vlgmr.msra.gmra.mrb[44].mxu0 %vm285_vm2, %v2731_v23  ;;  %4640 = vmatprep.subr.mxu0 %v4700_v0 }
  0x6e   : > { %4638 = vmatmul.mubr.msk.f32.vlgmr.msra.gmra.mrb[44].mxu1 %vm285_vm2, %v2732_v24  ;;  %4645 = vmatprep.subr.mxu1 %v4700_v0 }
  0x6f   : > { %4641 = vmatpush3.msk.msra.mxu0 %vm289_vm1, %v2749_v25  ;;  %4646 = vmatpush3.msk.msra.mxu1 %vm289_vm1, %v2750_v31 }
  0x70   : > { %4642 = vmatprep.mubr.msk.f32.mxu0 %vm4701_vm0, %v4700_v0  ;;  %4647 = vmatprep.mubr.msk.f32.mxu1 %vm4701_vm0, %v4700_v0 }
  0x71   : > { %4643 = vmatmul.mubr.msk.f32.vlgmr.msra.gmra.mrb[46].mxu0 %vm285_vm2, %v2733_v28 }
  0x72   : > { %4648 = vmatmul.mubr.msk.f32.vlgmr.msra.gmra.mrb[46].mxu1 %vm285_vm2, %v2734_v32 }
  0xe8   : > { %v5311_v35 = vpop.f32.mrb[0].mxu0 }
  0xe9   : > { %v5313_v30 = vpop.f32.mrb[0].mxu1  ;;  %v4414_v36 = vpop.f32.mrb[1].mxu0 }
  0xea   : > { %v4419_v37 = vpop.f32.mrb[1].mxu1 }
  0xec   : > { %v5315_v38 = vpop.f32.mrb[2].mxu0 }
  0xed   : > { %v5317_v39 = vpop.f32.mrb[2].mxu1  ;;  %v4424_v40 = vpop.f32.mrb[3].mxu0 }
  0xee   : > { %v4429_v41 = vpop.f32.mrb[3].mxu1 }
  0xf0   : > { %v5319_v42 = vpop.f32.mrb[4].mxu0 }
  0xf1   : > { %v5321_v43 = vpop.f32.mrb[4].mxu1  ;;  %v4434_v0 = vpop.f32.mrb[5].mxu0 }
  0xf2   : > { %v4439_v44 = vpop.f32.mrb[5].mxu1 }
  0xf4   : > { %v5323_v45 = vpop.f32.mrb[6].mxu0 }
  0xf5   : > { %v5325_v46 = vpop.f32.mrb[6].mxu1  ;;  %v4444_v47 = vpop.f32.mrb[7].mxu0 }
  0xf6   : > { %v4449_v48 = vpop.f32.mrb[7].mxu1 }
  0xf8   : > { %v5327_v49 = vpop.f32.mrb[8].mxu0 }
  0xf9   : > { %v5329_v50 = vpop.f32.mrb[8].mxu1  ;;  %v4454_v51 = vpop.f32.mrb[9].mxu0 }
  0xfa   : > { %v4459_v52 = vpop.f32.mrb[9].mxu1 }
  0xfc   : > { %v5331_v53 = vpop.f32.mrb[10].mxu0 }
  0xfd   : > { %v5333_v54 = vpop.f32.mrb[10].mxu1  ;;  %v4464_v55 = vpop.f32.mrb[11].mxu0 }
  0xfe   : > { %v4469_v56 = vpop.f32.mrb[11].mxu1 }
 0x100   : > { %v5335_v57 = vpop.f32.mrb[12].mxu0 }
 0x101   : > { %v5337_v58 = vpop.f32.mrb[12].mxu1  ;;  %v4474_v59 = vpop.f32.mrb[13].mxu0 }
 0x102   : > { %v4479_v60 = vpop.f32.mrb[13].mxu1 }
 0x104   : > { %v5339_v61 = vpop.f32.mrb[14].mxu0 }
 0x105   : > { %v5341_v62 = vpop.f32.mrb[14].mxu1  ;;  %v4484_v63 = vpop.f32.mrb[15].mxu0 }
 0x106   : > { %v4489_v1 = vpop.f32.mrb[15].mxu1 }
 0x108   : > { %v5350_v2 = vpop.f32.mrb[16].mxu0 }
 0x109   : > { %v3967_v33 = vsub.f32 %v5311_v35, %v5350_v2  ;;  %v5354_v34 = vpop.f32.mrb[16].mxu1  ;;  %v4494_v3 = vpop.f32.mrb[17].mxu0 }
 0x10a   : > { %v3968_v4 = vsub.f32 %v5313_v30, %v5354_v34  ;;  %v4499_v5 = vpop.f32.mrb[17].mxu1 }
 0x10b   : > { %3984 = vst.msk [vmem:[%s5348_s23] sm:$0x3] %vm3983_vm3, %v3967_v33 }
 0x10c   : > { %3985 = vst.msk [vmem:[%s5348_s23 + $0x2] sm:$0x3] %vm3983_vm3, %v3968_v4  ;;  %v5362_v6 = vpop.f32.mrb[18].mxu0 }
 0x10d   : > { %v3969_v7 = vsub.f32 %v5315_v38, %v5362_v6  ;;  %v5366_v8 = vpop.f32.mrb[18].mxu1  ;;  %v4504_v9 = vpop.f32.mrb[19].mxu0 }
 0x10e   : > { %v3970_v10 = vsub.f32 %v5317_v39, %v5366_v8  ;;  %v4509_v11 = vpop.f32.mrb[19].mxu1 }
 0x10f   : > { %3986 = vst.msk [vmem:[%s5348_s23 + $0x4] sm:$0x3] %vm3983_vm3, %v3969_v7 }
 0x110   : > { %3987 = vst.msk [vmem:[%s5348_s23 + $0x6] sm:$0x3] %vm3983_vm3, %v3970_v10  ;;  %v5374_v12 = vpop.f32.mrb[20].mxu0 }
 0x111   : > { %v3971_v13 = vsub.f32 %v5319_v42, %v5374_v12  ;;  %v5378_v14 = vpop.f32.mrb[20].mxu1  ;;  %v4514_v15 = vpop.f32.mrb[21].mxu0 }
 0x112   : > { %v3972_v16 = vsub.f32 %v5321_v43, %v5378_v14  ;;  %v4519_v17 = vpop.f32.mrb[21].mxu1 }
 0x113   : > { %3988 = vst.msk [vmem:[%s5348_s23 + $0x8] sm:$0x3] %vm3983_vm3, %v3971_v13 }
 0x114   : > { %3989 = vst.msk [vmem:[%s5348_s23 + $0xa] sm:$0x3] %vm3983_vm3, %v3972_v16  ;;  %v5386_v18 = vpop.f32.mrb[22].mxu0 }
 0x115   : > { %v3973_v19 = vsub.f32 %v5323_v45, %v5386_v18  ;;  %v5390_v20 = vpop.f32.mrb[22].mxu1  ;;  %v4524_v21 = vpop.f32.mrb[23].mxu0 }
 0x116   : > { %v3974_v22 = vsub.f32 %v5325_v46, %v5390_v20  ;;  %v4529_v23 = vpop.f32.mrb[23].mxu1 }
 0x117   : > { %3990 = vst.msk [vmem:[%s5348_s23 + $0xc] sm:$0x3] %vm3983_vm3, %v3973_v19 }
 0x118   : > { %3991 = vst.msk [vmem:[%s5348_s23 + $0xe] sm:$0x3] %vm3983_vm3, %v3974_v22  ;;  %v5398_v24 = vpop.f32.mrb[24].mxu0 }
 0x119   : > { %v3975_v25 = vsub.f32 %v5327_v49, %v5398_v24  ;;  %v5402_v26 = vpop.f32.mrb[24].mxu1  ;;  %v4534_v31 = vpop.f32.mrb[25].mxu0 }
 0x11a   : > { %v3976_v27 = vsub.f32 %v5329_v50, %v5402_v26  ;;  %v4539_v28 = vpop.f32.mrb[25].mxu1 }
 0x11b   : > { %3992 = vst.msk [vmem:[%s5348_s23 + $0x10] sm:$0x3] %vm3983_vm3, %v3975_v25 }
 0x11c   : > { %3993 = vst.msk [vmem:[%s5348_s23 + $0x12] sm:$0x3] %vm3983_vm3, %v3976_v27  ;;  %v5410_v29 = vpop.f32.mrb[26].mxu0 }
 0x11d   : > { %v3977_v32 = vsub.f32 %v5331_v53, %v5410_v29  ;;  %v5414_v36 = vpop.f32.mrb[26].mxu1  ;;  %v4544_v37 = vpop.f32.mrb[27].mxu0 }
 0x11e   : > { %v3978_v40 = vsub.f32 %v5333_v54, %v5414_v36  ;;  %v4549_v41 = vpop.f32.mrb[27].mxu1 }
 0x11f   : > { %3994 = vst.msk [vmem:[%s5348_s23 + $0x14] sm:$0x3] %vm3983_vm3, %v3977_v32 }
 0x120   : > { %3995 = vst.msk [vmem:[%s5348_s23 + $0x16] sm:$0x3] %vm3983_vm3, %v3978_v40  ;;  %v5422_v0 = vpop.f32.mrb[28].mxu0 }
 0x121   : > { %v3979_v44 = vsub.f32 %v5335_v57, %v5422_v0  ;;  %v5426_v47 = vpop.f32.mrb[28].mxu1  ;;  %v4554_v48 = vpop.f32.mrb[29].mxu0 }
 0x122   : > { %v3980_v51 = vsub.f32 %v5337_v58, %v5426_v47  ;;  %v4559_v52 = vpop.f32.mrb[29].mxu1 }
 0x123   : > { %3996 = vst.msk [vmem:[%s5348_s23 + $0x18] sm:$0x3] %vm3983_vm3, %v3979_v44 }
 0x124   : > { %3997 = vst.msk [vmem:[%s5348_s23 + $0x1a] sm:$0x3] %vm3983_vm3, %v3980_v51  ;;  %v5434_v55 = vpop.f32.mrb[30].mxu0 }
 0x125   : > { %v3981_v56 = vsub.f32 %v5339_v61, %v5434_v55  ;;  %v5438_v59 = vpop.f32.mrb[30].mxu1  ;;  %v4564_v60 = vpop.f32.mrb[31].mxu0 }
 0x126   : > { %v3982_v63 = vsub.f32 %v5341_v62, %v5438_v59  ;;  %v4569_v1 = vpop.f32.mrb[31].mxu1 }
 0x127   : > { %3998 = vst.msk [vmem:[%s5348_s23 + $0x1c] sm:$0x3] %vm3983_vm3, %v3981_v56 }
 0x128   : > { %3999 = vst.msk [vmem:[%s5348_s23 + $0x1e] sm:$0x3] %vm3983_vm3, %v3982_v63  ;;  %v2823_v33 = vpop.f32.mrb[32].mxu0 }
 0x129   : > { %v4000_v3 = vsub.f32 %v2823_v33, %v5311_v35  ;;  %v2899_v4 = vpop.f32.mrb[32].mxu1  ;;  %v4574_v5 = vpop.f32.mrb[33].mxu0 }
 0x12a   : > { %v4001_v7 = vsub.f32 %v2899_v4, %v5313_v30  ;;  %v4579_v9 = vpop.f32.mrb[33].mxu1 }
 0x12b   : > { %v4016_v10 = vsub.f32 %v4000_v3, %v5350_v2 }
 0x12c   : > { %v4017_v11 = vsub.f32 %v4001_v7, %v5354_v34  ;;  %v2975_v13 = vpop.f32.mrb[34].mxu0 }
 0x12d   : > { %4293 = vst.msk [vmem:[%s5348_s23 + $0x20] sm:$0x3] %vm3983_vm3, %v4016_v10  ;;  %v4002_v15 = vsub.f32 %v2975_v13, %v5315_v38  ;;  %v3051_v16 = vpop.f32.mrb[34].mxu1  ;;  %v4584_v17 = vpop.f32.mrb[35].mxu0 }
 0x12e   : > { %4294 = vst.msk [vmem:[%s5348_s23 + $0x22] sm:$0x3] %vm3983_vm3, %v4017_v11  ;;  %v4003_v35 = vsub.f32 %v3051_v16, %v5317_v39  ;;  %v4589_v19 = vpop.f32.mrb[35].mxu1 }
 0x12f   : > { %v4018_v30 = vsub.f32 %v4002_v15, %v5362_v6 }
 0x130   : > { %v4019_v2 = vsub.f32 %v4003_v35, %v5366_v8  ;;  %v3127_v34 = vpop.f32.mrb[36].mxu0 }
 0x131   : > { %4295 = vst.msk [vmem:[%s5348_s23 + $0x24] sm:$0x3] %vm3983_vm3, %v4018_v30  ;;  %v4004_v21 = vsub.f32 %v3127_v34, %v5319_v42  ;;  %v3203_v22 = vpop.f32.mrb[36].mxu1  ;;  %v4594_v38 = vpop.f32.mrb[37].mxu0 }
 0x132   : > { %4296 = vst.msk [vmem:[%s5348_s23 + $0x26] sm:$0x3] %vm3983_vm3, %v4019_v2  ;;  %v4005_v23 = vsub.f32 %v3203_v22, %v5321_v43  ;;  %v4599_v25 = vpop.f32.mrb[37].mxu1 }
 0x133   : > { %v4020_v39 = vsub.f32 %v4004_v21, %v5374_v12 }
 0x134   : > { %v4021_v6 = vsub.f32 %v4005_v23, %v5378_v14  ;;  %v3279_v8 = vpop.f32.mrb[38].mxu0 }
 0x135   : > { %4297 = vst.msk [vmem:[%s5348_s23 + $0x28] sm:$0x3] %vm3983_vm3, %v4020_v39  ;;  %v4006_v31 = vsub.f32 %v3279_v8, %v5323_v45  ;;  %v3355_v27 = vpop.f32.mrb[38].mxu1  ;;  %v4604_v42 = vpop.f32.mrb[39].mxu0 }
 0x136   : > { %4298 = vst.msk [vmem:[%s5348_s23 + $0x2a] sm:$0x3] %vm3983_vm3, %v4021_v6  ;;  %v4007_v28 = vsub.f32 %v3355_v27, %v5325_v46  ;;  %v4609_v32 = vpop.f32.mrb[39].mxu1 }
 0x137   : > { %v4022_v43 = vsub.f32 %v4006_v31, %v5386_v18 }
 0x138   : > { %v4023_v12 = vsub.f32 %v4007_v28, %v5390_v20  ;;  %v3431_v14 = vpop.f32.mrb[40].mxu0 }
 0x139   : > { %4299 = vst.msk [vmem:[%s5348_s23 + $0x2c] sm:$0x3] %vm3983_vm3, %v4022_v43  ;;  %v4008_v37 = vsub.f32 %v3431_v14, %v5327_v49  ;;  %v3507_v40 = vpop.f32.mrb[40].mxu1  ;;  %v4614_v45 = vpop.f32.mrb[41].mxu0 }
 0x13a   : > { %4300 = vst.msk [vmem:[%s5348_s23 + $0x2e] sm:$0x3] %vm3983_vm3, %v4023_v12  ;;  %v4009_v41 = vsub.f32 %v3507_v40, %v5329_v50  ;;  %v4619_v44 = vpop.f32.mrb[41].mxu1 }
 0x13b   : > { %v4024_v46 = vsub.f32 %v4008_v37, %v5398_v24 }
 0x13c   : > { %v4025_v18 = vsub.f32 %v4009_v41, %v5402_v26  ;;  %v3583_v20 = vpop.f32.mrb[42].mxu0 }
 0x13d   : > { %4301 = vst.msk [vmem:[%s5348_s23 + $0x30] sm:$0x3] %vm3983_vm3, %v4024_v46  ;;  %v4010_v48 = vsub.f32 %v3583_v20, %v5331_v53  ;;  %v3659_v51 = vpop.f32.mrb[42].mxu1  ;;  %v4624_v49 = vpop.f32.mrb[43].mxu0 }
 0x13e   : > { %4302 = vst.msk [vmem:[%s5348_s23 + $0x32] sm:$0x3] %vm3983_vm3, %v4025_v18  ;;  %v4011_v52 = vsub.f32 %v3659_v51, %v5333_v54  ;;  %v4629_v56 = vpop.f32.mrb[43].mxu1 }
 0x13f   : > { %v4026_v50 = vsub.f32 %v4010_v48, %v5410_v29 }
 0x140   : > { %v4027_v24 = vsub.f32 %v4011_v52, %v5414_v36  ;;  %v3735_v26 = vpop.f32.mrb[44].mxu0 }
 0x141   : > { %4303 = vst.msk [vmem:[%s5348_s23 + $0x34] sm:$0x3] %vm3983_vm3, %v4026_v50  ;;  %v4012_v60 = vsub.f32 %v3735_v26, %v5335_v57  ;;  %v3811_v63 = vpop.f32.mrb[44].mxu1  ;;  %v4634_v53 = vpop.f32.mrb[45].mxu0 }
 0x142   : > { %4304 = vst.msk [vmem:[%s5348_s23 + $0x36] sm:$0x3] %vm3983_vm3, %v4027_v24  ;;  %v4013_v1 = vsub.f32 %v3811_v63, %v5337_v58  ;;  %v4639_v54 = vpop.f32.mrb[45].mxu1 }
 0x143   : > { %v4028_v33 = vsub.f32 %v4012_v60, %v5422_v0 }
 0x144   : > { %v4029_v29 = vsub.f32 %v4013_v1, %v5426_v47  ;;  %v3887_v36 = vpop.f32.mrb[46].mxu0 }
 0x145   : > { %4305 = vst.msk [vmem:[%s5348_s23 + $0x38] sm:$0x3] %vm3983_vm3, %v4028_v33  ;;  %v4014_v3 = vsub.f32 %v3887_v36, %v5339_v61  ;;  %v3963_v4 = vpop.f32.mrb[46].mxu1  ;;  %v4644_v57 = vpop.f32.mrb[47].mxu0 }
 0x146   : > { %4306 = vst.msk [vmem:[%s5348_s23 + $0x3a] sm:$0x3] %vm3983_vm3, %v4029_v29  ;;  %v4015_v5 = vsub.f32 %v3963_v4, %v5341_v62  ;;  %v4649_v7 = vpop.f32.mrb[47].mxu1 }
 0x147   : > { %v4030_v9 = vsub.f32 %v4014_v3, %v5434_v55 }
 0x148   : > { %v4031_v58 = vsub.f32 %v4015_v5, %v5438_v59 }
 0x149   : > { %4307 = vst.msk [vmem:[%s5348_s23 + $0x3c] sm:$0x3] %vm3983_vm3, %v4030_v9 }
 0x14a   : > { %4308 = vst.msk [vmem:[%s5348_s23 + $0x3e] sm:$0x3] %vm3983_vm3, %v4031_v58 }
 0x14b PF: > { %s12_s11 = sadd.s32 1, %s4698_s11   ;;  %s5531_s9 = smov %s4694_s10 }
 0x14c   : > { %p9_p5 = scmp.ge.s32.totalorder %s12_s11, 4   ;;  %s5532_s10 = smov %s5534_s12 }
 0x14e   :  { %11 = sbr.rel (!%p9_p5) target bundleno = 2 (0x2), region = 64 }

</bundles_post_ra>
